<compile_context>
chip_gen: v5e
topology: v5e:2x2
jax: 0.10.0
libtpu: 0.0.40
codegen_flags: <defaults>
</compile_context>

<pallas_src>
import jax
import jax.numpy as jnp
from jax.experimental import pallas as pl
from jax.experimental.pallas import tpu as pltpu


def _pick_batch_block(bs: int) -> int:
    for cand in (8, 4, 2, 1):
        if bs % cand == 0:
            return cand
    return 1


@jax.jit
def mem_bank_blend(sample_idx, bg_mask, vid_feats, mem_flat):
    """
    sample_idx: (bs, v_len) int32   -- flat row indices into mem_flat
    bg_mask   : (bs, v_len) float32
    vid_feats : (bs, v_len, hid) float32
    mem_flat  : (n_rows, hid) float32   (n_rows = n_videos * v_len)
    returns   : (bs, v_len, hid) float32
    """
    bs, v_len, hid = vid_feats.shape
    n_rows = mem_flat.shape[0]
    b_blk = _pick_batch_block(bs)
    dt = vid_feats.dtype

    # Mask as a (bs, v_len, 1) tile that broadcasts over the hidden (lane) dim.
    bg_mask3 = bg_mask.reshape(bs, v_len, 1).astype(dt)

    def kernel(idx_ref,    # SMEM (bs, v_len) int32   [scalar prefetch]
               bgm_ref,    # VMEM (b_blk, v_len, 1)
               vid_ref,    # VMEM (b_blk, v_len, hid)
               mem_ref,    # VMEM (n_rows, hid)  -- resident memory bank
               out_ref):   # VMEM (b_blk, v_len, hid)
        b0 = pl.program_id(0) * b_blk
        # Gather the sampled background rows from the resident bank with
        # dynamic sublane slices (no DMA descriptors, no semaphores).
        rows = []
        for bb in range(b_blk):            # static unroll
            for t in range(v_len):         # static unroll
                r = idx_ref[b0 + bb, t]
                rows.append(mem_ref[pl.ds(r, 1), :])
        sampled = jnp.concatenate(rows, axis=0).reshape(b_blk, v_len, hid)

        vid = vid_ref[...]                 # (b_blk, v_len, hid)
        bgm = bgm_ref[...]                 # (b_blk, v_len, 1) broadcasts over hid
        # Exact PyTorch blend semantics (supports fractional masks).
        out_ref[...] = vid * (1.0 - bgm) + sampled.astype(dt) * bgm

    grid_spec = pltpu.PrefetchScalarGridSpec(
        num_scalar_prefetch=1,
        grid=(bs // b_blk,),
        in_specs=[
            pl.BlockSpec((b_blk, v_len, 1), lambda b, idx: (b, 0, 0)),    # bg_mask
            pl.BlockSpec((b_blk, v_len, hid), lambda b, idx: (b, 0, 0)),  # vid_feats
            pl.BlockSpec((n_rows, hid), lambda b, idx: (0, 0)),           # bank (resident)
        ],
        out_specs=pl.BlockSpec((b_blk, v_len, hid), lambda b, idx: (b, 0, 0)),
    )

    # VMEM budget: bank + double-buffered vid/out/mask tiles, with headroom.
    itemsize = jnp.dtype(dt).itemsize
    bank_bytes = n_rows * hid * itemsize
    tile_bytes = b_blk * v_len * (2 * hid + 1) * itemsize
    needed = 2 * (bank_bytes + tile_bytes) + (4 << 20)
    vmem_limit = int(min(max(needed, 32 << 20), 96 << 20))

    cost = pl.CostEstimate(
        flops=4 * bs * v_len * hid,
        transcendentals=0,
        bytes_accessed=(3 * bs * v_len * hid + n_rows * hid + bs * v_len) * itemsize,
    )

    return pl.pallas_call(
        kernel,
        grid_spec=grid_spec,
        out_shape=jax.ShapeDtypeStruct((bs, v_len, hid), dt),
        compiler_params=pltpu.CompilerParams(
            dimension_semantics=("parallel",),   # no cross-step state -> megacore OK
            vmem_limit_bytes=vmem_limit,
        ),
        cost_estimate=cost,
    )(sample_idx, bg_mask3, vid_feats, mem_flat)


# ----------------------------------------------------------------------------
# Host-side glue reproducing the torch.multinomial sampling semantics.
# ----------------------------------------------------------------------------
def sample_background_indices(key, vid_idx, bs, n_videos, v_len, training=True):
    # weight: (bs, n_videos), zero out own video when training
    weight = jnp.ones((bs, n_videos), jnp.float32)
    if training:
        weight = weight.at[jnp.arange(bs), vid_idx].set(0.0)
    # expand over v_len frames and flatten -> (bs, n_videos * v_len)
    weight_flat = jnp.broadcast_to(weight[:, :, None],
                                   (bs, n_videos, v_len)).reshape(bs, -1)
    # TODO(synk): torch.multinomial(replacement=True) over uniform weights is
    # reproduced with jax.random.categorical host-side (no Pallas equivalent).
    logits = jnp.where(weight_flat > 0, 0.0, -jnp.inf)
    sample_idx = jax.random.categorical(
        key, logits[:, None, :], shape=(bs, v_len))
    return sample_idx.astype(jnp.int32)


if __name__ == "__main__":
    bs, v_len, hid = 2, 16, 128
    n_videos = 8

    root = jax.random.PRNGKey(0)
    k_mem, k_feat, k_mask, k_samp = jax.random.split(root, 4)

    # Deterministic synthetic "memory bank" (replaces the h5 checkpoint).
    mem_bank = jax.random.normal(k_mem, (n_videos, v_len, hid), jnp.float32)
    mem_flat = mem_bank.reshape(-1, hid)

    vid_feats = jax.random.normal(k_feat, (bs, v_len, hid), jnp.float32)
    bg_mask = jax.random.bernoulli(k_mask, 0.4, (bs, v_len)).astype(jnp.float32)
    vid_idx = jnp.array([0, 3], jnp.int32)

    sample_idx = sample_background_indices(
        k_samp, vid_idx, bs, n_videos, v_len, training=True)

    out = mem_bank_blend(sample_idx, bg_mask, vid_feats, mem_flat)
    out = jax.block_until_ready(out)

    # Pure-JAX reference for the gather + blend hot path.
    sampled_ref = jnp.take(mem_flat, sample_idx, axis=0)           # (bs, v_len, hid)
    ref = (vid_feats * (1.0 - bg_mask)[..., None]
           + sampled_ref * bg_mask[..., None])

    if not jnp.allclose(out, ref, atol=1e-5, rtol=1e-5):
        raise AssertionError("Pallas MemBank output mismatch vs reference")

    print("KERNEL_OK")
</pallas_src>

<mosaic_0001>
module attributes {stable_mosaic.version = 11 : i64} {
  func.func @kernel(%arg0: i32, %arg1: memref<2x16xi32, #tpu.memory_space<smem>>, %arg2: memref<2x16x1xf32, #tpu.memory_space<vmem>>, %arg3: memref<2x16x128xf32, #tpu.memory_space<vmem>>, %arg4: memref<128x128xf32, #tpu.memory_space<vmem>>, %arg5: memref<2x16x128xf32, #tpu.memory_space<vmem>>) attributes {dimension_semantics = [#tpu.dimension_semantics<parallel>], iteration_bounds = array<i64: 1>, scalar_prefetch = 1 : i64, scratch_operands = 0 : i64, tpu.core_type = #tpu.core_type<tc>, window_params = [{transform_indices = @transform_0, window_bounds = array<i64: 2, 16, 1>}, {transform_indices = @transform_1, window_bounds = array<i64: 2, 16, 128>}, {pipeline_mode = #tpu.pipeline_mode<synchronous>, transform_indices = @transform_2, window_bounds = array<i64: 128, 128>}, {transform_indices = @transform_3, window_bounds = array<i64: 2, 16, 128>}]} {
    %c2_i32 = arith.constant 2 : i32
    %0 = arith.muli %arg0, %c2_i32 : i32
    %c0_i32 = arith.constant 0 : i32
    %1 = arith.addi %0, %c0_i32 : i32
    %2 = arith.index_cast %1 : i32 to index
    %c0 = arith.constant 0 : index
    %3 = memref.load %arg1[%2, %c0] : memref<2x16xi32, #tpu.memory_space<smem>>
    %4 = arith.index_cast %3 : i32 to index
    %c0_0 = arith.constant 0 : index
    %5 = vector.load %arg4[%4, %c0_0] : memref<128x128xf32, #tpu.memory_space<vmem>>, vector<1x128xf32>
    %c0_i32_1 = arith.constant 0 : i32
    %6 = arith.addi %0, %c0_i32_1 : i32
    %7 = arith.index_cast %6 : i32 to index
    %c1 = arith.constant 1 : index
    %8 = memref.load %arg1[%7, %c1] : memref<2x16xi32, #tpu.memory_space<smem>>
    %9 = arith.index_cast %8 : i32 to index
    %c0_2 = arith.constant 0 : index
    %10 = vector.load %arg4[%9, %c0_2] : memref<128x128xf32, #tpu.memory_space<vmem>>, vector<1x128xf32>
    %c0_i32_3 = arith.constant 0 : i32
    %11 = arith.addi %0, %c0_i32_3 : i32
    %12 = arith.index_cast %11 : i32 to index
    %c2 = arith.constant 2 : index
    %13 = memref.load %arg1[%12, %c2] : memref<2x16xi32, #tpu.memory_space<smem>>
    %14 = arith.index_cast %13 : i32 to index
    %c0_4 = arith.constant 0 : index
    %15 = vector.load %arg4[%14, %c0_4] : memref<128x128xf32, #tpu.memory_space<vmem>>, vector<1x128xf32>
    %c0_i32_5 = arith.constant 0 : i32
    %16 = arith.addi %0, %c0_i32_5 : i32
    %17 = arith.index_cast %16 : i32 to index
    %c3 = arith.constant 3 : index
    %18 = memref.load %arg1[%17, %c3] : memref<2x16xi32, #tpu.memory_space<smem>>
    %19 = arith.index_cast %18 : i32 to index
    %c0_6 = arith.constant 0 : index
    %20 = vector.load %arg4[%19, %c0_6] : memref<128x128xf32, #tpu.memory_space<vmem>>, vector<1x128xf32>
    %c0_i32_7 = arith.constant 0 : i32
    %21 = arith.addi %0, %c0_i32_7 : i32
    %22 = arith.index_cast %21 : i32 to index
    %c4 = arith.constant 4 : index
    %23 = memref.load %arg1[%22, %c4] : memref<2x16xi32, #tpu.memory_space<smem>>
    %24 = arith.index_cast %23 : i32 to index
    %c0_8 = arith.constant 0 : index
    %25 = vector.load %arg4[%24, %c0_8] : memref<128x128xf32, #tpu.memory_space<vmem>>, vector<1x128xf32>
    %c0_i32_9 = arith.constant 0 : i32
    %26 = arith.addi %0, %c0_i32_9 : i32
    %27 = arith.index_cast %26 : i32 to index
    %c5 = arith.constant 5 : index
    %28 = memref.load %arg1[%27, %c5] : memref<2x16xi32, #tpu.memory_space<smem>>
    %29 = arith.index_cast %28 : i32 to index
    %c0_10 = arith.constant 0 : index
    %30 = vector.load %arg4[%29, %c0_10] : memref<128x128xf32, #tpu.memory_space<vmem>>, vector<1x128xf32>
    %c0_i32_11 = arith.constant 0 : i32
    %31 = arith.addi %0, %c0_i32_11 : i32
    %32 = arith.index_cast %31 : i32 to index
    %c6 = arith.constant 6 : index
    %33 = memref.load %arg1[%32, %c6] : memref<2x16xi32, #tpu.memory_space<smem>>
    %34 = arith.index_cast %33 : i32 to index
    %c0_12 = arith.constant 0 : index
    %35 = vector.load %arg4[%34, %c0_12] : memref<128x128xf32, #tpu.memory_space<vmem>>, vector<1x128xf32>
    %c0_i32_13 = arith.constant 0 : i32
    %36 = arith.addi %0, %c0_i32_13 : i32
    %37 = arith.index_cast %36 : i32 to index
    %c7 = arith.constant 7 : index
    %38 = memref.load %arg1[%37, %c7] : memref<2x16xi32, #tpu.memory_space<smem>>
    %39 = arith.index_cast %38 : i32 to index
    %c0_14 = arith.constant 0 : index
    %40 = vector.load %arg4[%39, %c0_14] : memref<128x128xf32, #tpu.memory_space<vmem>>, vector<1x128xf32>
    %c0_i32_15 = arith.constant 0 : i32
    %41 = arith.addi %0, %c0_i32_15 : i32
    %42 = arith.index_cast %41 : i32 to index
    %c8 = arith.constant 8 : index
    %43 = memref.load %arg1[%42, %c8] : memref<2x16xi32, #tpu.memory_space<smem>>
    %44 = arith.index_cast %43 : i32 to index
    %c0_16 = arith.constant 0 : index
    %45 = vector.load %arg4[%44, %c0_16] : memref<128x128xf32, #tpu.memory_space<vmem>>, vector<1x128xf32>
    %c0_i32_17 = arith.constant 0 : i32
    %46 = arith.addi %0, %c0_i32_17 : i32
    %47 = arith.index_cast %46 : i32 to index
    %c9 = arith.constant 9 : index
    %48 = memref.load %arg1[%47, %c9] : memref<2x16xi32, #tpu.memory_space<smem>>
    %49 = arith.index_cast %48 : i32 to index
    %c0_18 = arith.constant 0 : index
    %50 = vector.load %arg4[%49, %c0_18] : memref<128x128xf32, #tpu.memory_space<vmem>>, vector<1x128xf32>
    %c0_i32_19 = arith.constant 0 : i32
    %51 = arith.addi %0, %c0_i32_19 : i32
    %52 = arith.index_cast %51 : i32 to index
    %c10 = arith.constant 10 : index
    %53 = memref.load %arg1[%52, %c10] : memref<2x16xi32, #tpu.memory_space<smem>>
    %54 = arith.index_cast %53 : i32 to index
    %c0_20 = arith.constant 0 : index
    %55 = vector.load %arg4[%54, %c0_20] : memref<128x128xf32, #tpu.memory_space<vmem>>, vector<1x128xf32>
    %c0_i32_21 = arith.constant 0 : i32
    %56 = arith.addi %0, %c0_i32_21 : i32
    %57 = arith.index_cast %56 : i32 to index
    %c11 = arith.constant 11 : index
    %58 = memref.load %arg1[%57, %c11] : memref<2x16xi32, #tpu.memory_space<smem>>
    %59 = arith.index_cast %58 : i32 to index
    %c0_22 = arith.constant 0 : index
    %60 = vector.load %arg4[%59, %c0_22] : memref<128x128xf32, #tpu.memory_space<vmem>>, vector<1x128xf32>
    %c0_i32_23 = arith.constant 0 : i32
    %61 = arith.addi %0, %c0_i32_23 : i32
    %62 = arith.index_cast %61 : i32 to index
    %c12 = arith.constant 12 : index
    %63 = memref.load %arg1[%62, %c12] : memref<2x16xi32, #tpu.memory_space<smem>>
    %64 = arith.index_cast %63 : i32 to index
    %c0_24 = arith.constant 0 : index
    %65 = vector.load %arg4[%64, %c0_24] : memref<128x128xf32, #tpu.memory_space<vmem>>, vector<1x128xf32>
    %c0_i32_25 = arith.constant 0 : i32
    %66 = arith.addi %0, %c0_i32_25 : i32
    %67 = arith.index_cast %66 : i32 to index
    %c13 = arith.constant 13 : index
    %68 = memref.load %arg1[%67, %c13] : memref<2x16xi32, #tpu.memory_space<smem>>
    %69 = arith.index_cast %68 : i32 to index
    %c0_26 = arith.constant 0 : index
    %70 = vector.load %arg4[%69, %c0_26] : memref<128x128xf32, #tpu.memory_space<vmem>>, vector<1x128xf32>
    %c0_i32_27 = arith.constant 0 : i32
    %71 = arith.addi %0, %c0_i32_27 : i32
    %72 = arith.index_cast %71 : i32 to index
    %c14 = arith.constant 14 : index
    %73 = memref.load %arg1[%72, %c14] : memref<2x16xi32, #tpu.memory_space<smem>>
    %74 = arith.index_cast %73 : i32 to index
    %c0_28 = arith.constant 0 : index
    %75 = vector.load %arg4[%74, %c0_28] : memref<128x128xf32, #tpu.memory_space<vmem>>, vector<1x128xf32>
    %c0_i32_29 = arith.constant 0 : i32
    %76 = arith.addi %0, %c0_i32_29 : i32
    %77 = arith.index_cast %76 : i32 to index
    %c15 = arith.constant 15 : index
    %78 = memref.load %arg1[%77, %c15] : memref<2x16xi32, #tpu.memory_space<smem>>
    %79 = arith.index_cast %78 : i32 to index
    %c0_30 = arith.constant 0 : index
    %80 = vector.load %arg4[%79, %c0_30] : memref<128x128xf32, #tpu.memory_space<vmem>>, vector<1x128xf32>
    %c1_i32 = arith.constant 1 : i32
    %81 = arith.addi %0, %c1_i32 : i32
    %82 = arith.index_cast %81 : i32 to index
    %c0_31 = arith.constant 0 : index
    %83 = memref.load %arg1[%82, %c0_31] : memref<2x16xi32, #tpu.memory_space<smem>>
    %84 = arith.index_cast %83 : i32 to index
    %c0_32 = arith.constant 0 : index
    %85 = vector.load %arg4[%84, %c0_32] : memref<128x128xf32, #tpu.memory_space<vmem>>, vector<1x128xf32>
    %c1_i32_33 = arith.constant 1 : i32
    %86 = arith.addi %0, %c1_i32_33 : i32
    %87 = arith.index_cast %86 : i32 to index
    %c1_34 = arith.constant 1 : index
    %88 = memref.load %arg1[%87, %c1_34] : memref<2x16xi32, #tpu.memory_space<smem>>
    %89 = arith.index_cast %88 : i32 to index
    %c0_35 = arith.constant 0 : index
    %90 = vector.load %arg4[%89, %c0_35] : memref<128x128xf32, #tpu.memory_space<vmem>>, vector<1x128xf32>
    %c1_i32_36 = arith.constant 1 : i32
    %91 = arith.addi %0, %c1_i32_36 : i32
    %92 = arith.index_cast %91 : i32 to index
    %c2_37 = arith.constant 2 : index
    %93 = memref.load %arg1[%92, %c2_37] : memref<2x16xi32, #tpu.memory_space<smem>>
    %94 = arith.index_cast %93 : i32 to index
    %c0_38 = arith.constant 0 : index
    %95 = vector.load %arg4[%94, %c0_38] : memref<128x128xf32, #tpu.memory_space<vmem>>, vector<1x128xf32>
    %c1_i32_39 = arith.constant 1 : i32
    %96 = arith.addi %0, %c1_i32_39 : i32
    %97 = arith.index_cast %96 : i32 to index
    %c3_40 = arith.constant 3 : index
    %98 = memref.load %arg1[%97, %c3_40] : memref<2x16xi32, #tpu.memory_space<smem>>
    %99 = arith.index_cast %98 : i32 to index
    %c0_41 = arith.constant 0 : index
    %100 = vector.load %arg4[%99, %c0_41] : memref<128x128xf32, #tpu.memory_space<vmem>>, vector<1x128xf32>
    %c1_i32_42 = arith.constant 1 : i32
    %101 = arith.addi %0, %c1_i32_42 : i32
    %102 = arith.index_cast %101 : i32 to index
    %c4_43 = arith.constant 4 : index
    %103 = memref.load %arg1[%102, %c4_43] : memref<2x16xi32, #tpu.memory_space<smem>>
    %104 = arith.index_cast %103 : i32 to index
    %c0_44 = arith.constant 0 : index
    %105 = vector.load %arg4[%104, %c0_44] : memref<128x128xf32, #tpu.memory_space<vmem>>, vector<1x128xf32>
    %c1_i32_45 = arith.constant 1 : i32
    %106 = arith.addi %0, %c1_i32_45 : i32
    %107 = arith.index_cast %106 : i32 to index
    %c5_46 = arith.constant 5 : index
    %108 = memref.load %arg1[%107, %c5_46] : memref<2x16xi32, #tpu.memory_space<smem>>
    %109 = arith.index_cast %108 : i32 to index
    %c0_47 = arith.constant 0 : index
    %110 = vector.load %arg4[%109, %c0_47] : memref<128x128xf32, #tpu.memory_space<vmem>>, vector<1x128xf32>
    %c1_i32_48 = arith.constant 1 : i32
    %111 = arith.addi %0, %c1_i32_48 : i32
    %112 = arith.index_cast %111 : i32 to index
    %c6_49 = arith.constant 6 : index
    %113 = memref.load %arg1[%112, %c6_49] : memref<2x16xi32, #tpu.memory_space<smem>>
    %114 = arith.index_cast %113 : i32 to index
    %c0_50 = arith.constant 0 : index
    %115 = vector.load %arg4[%114, %c0_50] : memref<128x128xf32, #tpu.memory_space<vmem>>, vector<1x128xf32>
    %c1_i32_51 = arith.constant 1 : i32
    %116 = arith.addi %0, %c1_i32_51 : i32
    %117 = arith.index_cast %116 : i32 to index
    %c7_52 = arith.constant 7 : index
    %118 = memref.load %arg1[%117, %c7_52] : memref<2x16xi32, #tpu.memory_space<smem>>
    %119 = arith.index_cast %118 : i32 to index
    %c0_53 = arith.constant 0 : index
    %120 = vector.load %arg4[%119, %c0_53] : memref<128x128xf32, #tpu.memory_space<vmem>>, vector<1x128xf32>
    %c1_i32_54 = arith.constant 1 : i32
    %121 = arith.addi %0, %c1_i32_54 : i32
    %122 = arith.index_cast %121 : i32 to index
    %c8_55 = arith.constant 8 : index
    %123 = memref.load %arg1[%122, %c8_55] : memref<2x16xi32, #tpu.memory_space<smem>>
    %124 = arith.index_cast %123 : i32 to index
    %c0_56 = arith.constant 0 : index
    %125 = vector.load %arg4[%124, %c0_56] : memref<128x128xf32, #tpu.memory_space<vmem>>, vector<1x128xf32>
    %c1_i32_57 = arith.constant 1 : i32
    %126 = arith.addi %0, %c1_i32_57 : i32
    %127 = arith.index_cast %126 : i32 to index
    %c9_58 = arith.constant 9 : index
    %128 = memref.load %arg1[%127, %c9_58] : memref<2x16xi32, #tpu.memory_space<smem>>
    %129 = arith.index_cast %128 : i32 to index
    %c0_59 = arith.constant 0 : index
    %130 = vector.load %arg4[%129, %c0_59] : memref<128x128xf32, #tpu.memory_space<vmem>>, vector<1x128xf32>
    %c1_i32_60 = arith.constant 1 : i32
    %131 = arith.addi %0, %c1_i32_60 : i32
    %132 = arith.index_cast %131 : i32 to index
    %c10_61 = arith.constant 10 : index
    %133 = memref.load %arg1[%132, %c10_61] : memref<2x16xi32, #tpu.memory_space<smem>>
    %134 = arith.index_cast %133 : i32 to index
    %c0_62 = arith.constant 0 : index
    %135 = vector.load %arg4[%134, %c0_62] : memref<128x128xf32, #tpu.memory_space<vmem>>, vector<1x128xf32>
    %c1_i32_63 = arith.constant 1 : i32
    %136 = arith.addi %0, %c1_i32_63 : i32
    %137 = arith.index_cast %136 : i32 to index
    %c11_64 = arith.constant 11 : index
    %138 = memref.load %arg1[%137, %c11_64] : memref<2x16xi32, #tpu.memory_space<smem>>
    %139 = arith.index_cast %138 : i32 to index
    %c0_65 = arith.constant 0 : index
    %140 = vector.load %arg4[%139, %c0_65] : memref<128x128xf32, #tpu.memory_space<vmem>>, vector<1x128xf32>
    %c1_i32_66 = arith.constant 1 : i32
    %141 = arith.addi %0, %c1_i32_66 : i32
    %142 = arith.index_cast %141 : i32 to index
    %c12_67 = arith.constant 12 : index
    %143 = memref.load %arg1[%142, %c12_67] : memref<2x16xi32, #tpu.memory_space<smem>>
    %144 = arith.index_cast %143 : i32 to index
    %c0_68 = arith.constant 0 : index
    %145 = vector.load %arg4[%144, %c0_68] : memref<128x128xf32, #tpu.memory_space<vmem>>, vector<1x128xf32>
    %c1_i32_69 = arith.constant 1 : i32
    %146 = arith.addi %0, %c1_i32_69 : i32
    %147 = arith.index_cast %146 : i32 to index
    %c13_70 = arith.constant 13 : index
    %148 = memref.load %arg1[%147, %c13_70] : memref<2x16xi32, #tpu.memory_space<smem>>
    %149 = arith.index_cast %148 : i32 to index
    %c0_71 = arith.constant 0 : index
    %150 = vector.load %arg4[%149, %c0_71] : memref<128x128xf32, #tpu.memory_space<vmem>>, vector<1x128xf32>
    %c1_i32_72 = arith.constant 1 : i32
    %151 = arith.addi %0, %c1_i32_72 : i32
    %152 = arith.index_cast %151 : i32 to index
    %c14_73 = arith.constant 14 : index
    %153 = memref.load %arg1[%152, %c14_73] : memref<2x16xi32, #tpu.memory_space<smem>>
    %154 = arith.index_cast %153 : i32 to index
    %c0_74 = arith.constant 0 : index
    %155 = vector.load %arg4[%154, %c0_74] : memref<128x128xf32, #tpu.memory_space<vmem>>, vector<1x128xf32>
    %c1_i32_75 = arith.constant 1 : i32
    %156 = arith.addi %0, %c1_i32_75 : i32
    %157 = arith.index_cast %156 : i32 to index
    %c15_76 = arith.constant 15 : index
    %158 = memref.load %arg1[%157, %c15_76] : memref<2x16xi32, #tpu.memory_space<smem>>
    %159 = arith.index_cast %158 : i32 to index
    %c0_77 = arith.constant 0 : index
    %160 = vector.load %arg4[%159, %c0_77] : memref<128x128xf32, #tpu.memory_space<vmem>>, vector<1x128xf32>
    %161 = tpu.concatenate %5, %10, %15, %20, %25, %30, %35, %40, %45, %50, %55, %60, %65, %70, %75, %80 in 0 : vector<1x128xf32>, vector<1x128xf32>, vector<1x128xf32>, vector<1x128xf32>, vector<1x128xf32>, vector<1x128xf32>, vector<1x128xf32>, vector<1x128xf32>, vector<1x128xf32>, vector<1x128xf32>, vector<1x128xf32>, vector<1x128xf32>, vector<1x128xf32>, vector<1x128xf32>, vector<1x128xf32>, vector<1x128xf32> -> vector<16x128xf32>
    %162 = tpu.concatenate %85, %90, %95, %100, %105, %110, %115, %120, %125, %130, %135, %140, %145, %150, %155, %160 in 0 : vector<1x128xf32>, vector<1x128xf32>, vector<1x128xf32>, vector<1x128xf32>, vector<1x128xf32>, vector<1x128xf32>, vector<1x128xf32>, vector<1x128xf32>, vector<1x128xf32>, vector<1x128xf32>, vector<1x128xf32>, vector<1x128xf32>, vector<1x128xf32>, vector<1x128xf32>, vector<1x128xf32>, vector<1x128xf32> -> vector<16x128xf32>
    %163 = tpu.concatenate %161, %162 in 0 : vector<16x128xf32>, vector<16x128xf32> -> vector<32x128xf32>
    %164 = vector.shape_cast %163 : vector<32x128xf32> to vector<2x16x128xf32>
    %c0_78 = arith.constant 0 : index
    %c0_79 = arith.constant 0 : index
    %c0_80 = arith.constant 0 : index
    %165 = vector.load %arg3[%c0_78, %c0_79, %c0_80] : memref<2x16x128xf32, #tpu.memory_space<vmem>>, vector<2x16x128xf32>
    %c0_81 = arith.constant 0 : index
    %c0_82 = arith.constant 0 : index
    %c0_83 = arith.constant 0 : index
    %166 = vector.load %arg2[%c0_81, %c0_82, %c0_83] : memref<2x16x1xf32, #tpu.memory_space<vmem>>, vector<2x16x1xf32>
    %cst = arith.constant 1.000000e+00 : f32
    %167 = vector.broadcast %cst : f32 to vector<2x16x1xf32>
    %168 = arith.subf %167, %166 : vector<2x16x1xf32>
    %169 = vector.broadcast %168 : vector<2x16x1xf32> to vector<2x16x128xf32>
    %170 = arith.mulf %165, %169 : vector<2x16x128xf32>
    %171 = vector.broadcast %166 : vector<2x16x1xf32> to vector<2x16x128xf32>
    %172 = arith.mulf %164, %171 : vector<2x16x128xf32>
    %173 = arith.addf %170, %172 : vector<2x16x128xf32>
    %c0_84 = arith.constant 0 : index
    %c0_85 = arith.constant 0 : index
    %c0_86 = arith.constant 0 : index
    %174 = vector.load %arg5[%c0_84, %c0_85, %c0_86] : memref<2x16x128xf32, #tpu.memory_space<vmem>>, vector<2x16x128xf32>
    tpu.vector_store %arg5[%c0_84, %c0_85, %c0_86], %173 {strides = array<i32>} : memref<2x16x128xf32, #tpu.memory_space<vmem>>, vector<2x16x128xf32>,
    return
  }
  func.func @transform_0(%arg0: i32, %arg1: memref<2x16xi32, #tpu.memory_space<smem>>) -> (i32, i32, i32) {
    %c0_i32 = arith.constant 0 : i32
    %c0_i32_0 = arith.constant 0 : i32
    %c0_i32_1 = arith.constant 0 : i32
    return %arg0, %c0_i32, %c0_i32_0 : i32, i32, i32
  }
  func.func @transform_1(%arg0: i32, %arg1: memref<2x16xi32, #tpu.memory_space<smem>>) -> (i32, i32, i32) {
    %c0_i32 = arith.constant 0 : i32
    %c0_i32_0 = arith.constant 0 : i32
    %c0_i32_1 = arith.constant 0 : i32
    return %arg0, %c0_i32, %c0_i32_0 : i32, i32, i32
  }
  func.func @transform_2(%arg0: i32, %arg1: memref<2x16xi32, #tpu.memory_space<smem>>) -> (i32, i32) {
    %c0_i32 = arith.constant 0 : i32
    %c0_i32_0 = arith.constant 0 : i32
    %c0_i32_1 = arith.constant 0 : i32
    return %c0_i32, %c0_i32_0 : i32, i32
  }
  func.func @transform_3(%arg0: i32, %arg1: memref<2x16xi32, #tpu.memory_space<smem>>) -> (i32, i32, i32) {
    %c0_i32 = arith.constant 0 : i32
    %c0_i32_0 = arith.constant 0 : i32
    %c0_i32_1 = arith.constant 0 : i32
    return %arg0, %c0_i32, %c0_i32_0 : i32, i32, i32
  }
}

</mosaic_0001>

<bundles_post_ra>
// kernel: mem_bank_blend.1
= control target key start
LH: loop header
LB: loop body
LE: loop exit
PB: predicated region body
PF: predicated region fallthrough
CT: control target
= control target key end

     0   :  { %s514_s18 = smov [#allocation3]   ;;  %s693_s0 = inlined_call_operand.vmem [shape: s32[2,16], index: 0, kind: input, shape index: {}]   ;;  %s694_s1 = inlined_call_operand.vmem [shape: f32[2,16,1], index: 1, kind: input, shape index: {}]   ;;  %s695_s2 = inlined_call_operand.vmem [shape: f32[2,16,128], index: 2, kind: input, shape index: {}]   ;;  %s696_s3 = inlined_call_operand.hbm [shape: f32[128,128], index: 3, kind: input, shape index: {}]   ;;  %s697_s4 = inlined_call_operand.hbm [shape: f32[2,16,128], index: 4, kind: output, shape index: {}]  }
   0x1   :  { %s10_s17 = sshll.u32 %s693_s0, 4  ;;  %s11_s17 = int_to_ptr.vmem [resolvable:$true] %s10_s17 }
   0x2   :  { %13 = dma.vmem_to_smem %s11_s17, 32, %s514_s18, [#allocation2] }
   0x3   :  { %508 = dma.done.wait [#allocation2], 32 }
   0x4   :  { %509 = vsyncadd [#allocation2], 4294967264 }
   0x5   :  { %16 = sfence }
   0x6   :  { %17 = vsyncpa [#allocation5], 0 }
   0x7   :  { %18 = vsyncpa [#allocation6], 0  ;;  %s27_s21 = sshll.u32 %s696_s3, 4  ;;  %s515_s22 = smov [#allocation4]   ;;  %s28_s21 = int_to_ptr.hbm [resolvable:$true] %s27_s21 }
   0x8   :  { %s29_s23 = sshll.u32 %s515_s22, 4  ;;  %s516_s24 = smov 128   ;;  %s30_s23 = int_to_ptr.vmem [resolvable:$true] %s29_s23 }
   0x9   :  { %s517_s25 = smov 8  }
   0xa   :  { %35 = dma.hbm_to_vmem [thread:$0]  %s28_s21, 2048, %s30_s23, [#allocation5], %s516_s24, %s516_s24, %s517_s25  }
   0xb   :  { %510 = dma.done.wait [#allocation5], 2048  }
   0xc   :  { %511 = vsyncadd [#allocation5], 4294965248  ;;  %v518_v0 = vmov 0   ;;  %v295_v1 = vld [vmem:[%s694_s1 + $0x10] sm:$0xff]  ;;  %v293_v2 = vld [vmem:[%s694_s1] sm:$0xff]  ;;  %s42_s6 = sld [smem:[#allocation3]] }
   0xd   :  { %447 = vset.pattern.permute.xlu1 %v518_v0  ;;  %446 = vset.pattern.permute.xlu0 %v518_v0  ;;  %v299_v3 = vsub.f32 1.0, %v295_v1  ;;  %v297_v4 = vsub.f32 1.0, %v293_v2  ;;  %v296_v5 = vld [vmem:[%s694_s1 + $0x18] sm:$0xff]  ;;  %v294_v6 = vld [vmem:[%s694_s1 + $0x8] sm:$0xff]  ;;  %s408_s7 = sld [smem:[#allocation3 + $0x1]]  ;;  %vm212_vm0 = vcmask 1040384  }
   0xe   :  { %445 = vset.pattern.permute.xlu2 %v518_v0  ;;  %v300_v7 = vsub.f32 1.0, %v296_v5  ;;  %v298_v8 = vsub.f32 1.0, %v294_v6  ;;  %s409_s8 = sld [smem:[#allocation3 + $0x2]]  ;;  %vm214_vm1 = vcmask 1041408   ;;  %vm216_vm2 = vcmask 1042432   ;;  %v289_v62 = vld [vmem:[%s695_s2] sm:$0xff] }
   0xf   :  { %327 = vperm.xlu2 %445, %v293_v2   ;;  %313 = vperm.xlu1 %447, %v299_v3   ;;  %s410_s9 = sld [smem:[#allocation3 + $0x3]]  ;;  %vm218_vm3 = vcmask 1043456   ;;  %vm220_vm4 = vcmask 1044480   ;;  %vm222_vm5 = vcmask 1045504   ;;  %vm224_vm6 = vcmask 1046528  }
  0x10   :  { %303 = vperm.xlu0 %446, %v297_v4   ;;  %s566_s10 = sld [smem:[#allocation3 + $0x4]] }
  0x11   :  { %s568_s11 = sld [smem:[#allocation3 + $0x5]] }
  0x12   :  { %s570_s12 = sld [smem:[#allocation3 + $0x6]]  ;;  %s43_s26 = scalar_lea.vmem [#allocation4], %s42_s6 }
  0x13   :  { %s572_s13 = sld [smem:[#allocation3 + $0x7]]  ;;  %s47_s19 = scalar_lea.vmem [#allocation4], %s408_s7  ;;  %v44_v12 = vld [vmem:[%s43_s26] sm:$0x1] }
  0x14   :  { %s574_s1 = sld [smem:[#allocation3 + $0x8]]  ;;  %v48_v9 = vld [vmem:[%s47_s19] sm:$0x1]  ;;  %s51_s23 = scalar_lea.vmem [#allocation4], %s409_s8 }
  0x15   :  { %s416_s14 = sld [smem:[#allocation3 + $0x9]]  ;;  %v52_v10 = vld [vmem:[%s51_s23] sm:$0x1]  ;;  %v171_v11 = vrot.slane %v48_v9, 7  ;;  %s55_s28 = scalar_lea.vmem [#allocation4], %s410_s9 }
  0x16   :  { %s576_s15 = sld [smem:[#allocation3 + $0xa]]  ;;  %v56_v13 = vld [vmem:[%s55_s28] sm:$0x1]  ;;  %v174_v14 = vrot.slane %v52_v10, 6  ;;  %s59_s7 = scalar_lea.vmem [#allocation4], %s566_s10 }
  0x17   :  { %332 = vperm.xlu2 %445, %v294_v6   ;;  %318 = vperm.xlu1 %447, %v300_v7   ;;  %s578_s16 = sld [smem:[#allocation3 + $0xb]]  ;;  %v213_v15 = vsel %vm212_vm0, %v44_v12, %v171_v11  ;;  %v60_v17 = vld [vmem:[%s59_s7] sm:$0x1]  ;;  %v177_v18 = vrot.slane %v56_v13, 5  ;;  %s63_s23 = scalar_lea.vmem [#allocation4], %s568_s11 }
  0x18   :  { %308 = vperm.xlu0 %446, %v298_v8   ;;  %s580_s17 = sld [smem:[#allocation3 + $0xc]]  ;;  %v215_v19 = vsel %vm214_vm1, %v213_v15, %v174_v14  ;;  %v64_v22 = vld [vmem:[%s63_s23] sm:$0x1]  ;;  %v180_v23 = vrot.slane %v60_v17, 4 }
  0x19   :  { %s582_s18 = sld [smem:[#allocation3 + $0xd]]  ;;  %v217_v25 = vsel %vm216_vm2, %v215_v19, %v177_v18  ;;  %v183_v29 = vrot.slane %v64_v22, 3 }
  0x1a   :  { %s584_s20 = sld [smem:[#allocation3 + $0xe]]  ;;  %s75_s10 = scalar_lea.vmem [#allocation4], %s574_s1  ;;  %v219_v31 = vsel %vm218_vm3, %v217_v25, %v180_v23 }
  0x1b   :  { %s586_s21 = sld [smem:[#allocation3 + $0xf]]  ;;  %s79_s5 = scalar_lea.vmem [#allocation4], %s416_s14  ;;  %v76_v24 = vld [vmem:[%s75_s10] sm:$0x1]  ;;  %v221_v39 = vsel %vm220_vm4, %v219_v31, %v183_v29  ;;  %v290_v29 = vld [vmem:[%s695_s2 + $0x8] sm:$0xff] }
  0x1c   :  { %s588_s22 = sld [smem:[#allocation3 + $0x88]]  ;;  %v80_v16 = vld [vmem:[%s79_s5] sm:$0x1]  ;;  %s83_s19 = scalar_lea.vmem [#allocation4], %s576_s15 }
  0x1d   :  { %s590_s0 = sld [smem:[#allocation3 + $0x89]]  ;;  %v84_v20 = vld [vmem:[%s83_s19] sm:$0x1]  ;;  %v192_v21 = vrot.slane %v80_v16, 7  ;;  %s87_s28 = scalar_lea.vmem [#allocation4], %s578_s16 }
  0x1e   :  { %s592_s3 = sld [smem:[#allocation3 + $0x8a]]  ;;  %v88_v26 = vld [vmem:[%s87_s28] sm:$0x1]  ;;  %v195_v27 = vrot.slane %v84_v20, 6  ;;  %s67_s5 = scalar_lea.vmem [#allocation4], %s570_s12 }
  0x1f   :  { %342 = vperm.xlu1 %447, %v296_v5   ;;  %s594_s27 = sld [smem:[#allocation3 + $0x8b]]  ;;  %v68_v28 = vld [vmem:[%s67_s5] sm:$0x1]  ;;  %v226_v30 = vsel %vm212_vm0, %v76_v24, %v192_v21  ;;  %s71_s16 = scalar_lea.vmem [#allocation4], %s572_s13  ;;  %v198_v34 = vrot.slane %v88_v26, 5 }
  0x20   :  { %337 = vperm.xlu0 %446, %v295_v1   ;;  %s596_s29 = sld [smem:[#allocation3 + $0x8c]]  ;;  %v72_v32 = vld [vmem:[%s71_s16] sm:$0x1]  ;;  %s91_s7 = scalar_lea.vmem [#allocation4], %s580_s17  ;;  %v186_v35 = vrot.slane %v68_v28, 2  ;;  %v227_v36 = vsel %vm214_vm1, %v226_v30, %v195_v27 }
  0x21   :  { %s599_s30 = sld [smem:[#allocation3 + $0x81]]  ;;  %v92_v33 = vld [vmem:[%s91_s7] sm:$0x1]  ;;  %v189_v40 = vrot.slane %v72_v32, 1  ;;  %s95_s13 = scalar_lea.vmem [#allocation4], %s582_s18  ;;  %v228_v43 = vsel %vm216_vm2, %v227_v36, %v198_v34 }
  0x22   :  { %s601_s6 = sld [smem:[#allocation3 + $0x8d]]  ;;  %v96_v41 = vld [vmem:[%s95_s13] sm:$0x1]  ;;  %v201_v42 = vrot.slane %v92_v33, 4  ;;  %v223_v48 = vsel %vm222_vm5, %v221_v39, %v186_v35  ;;  %s99_s18 = scalar_lea.vmem [#allocation4], %s584_s20 }
  0x23   :  { %s604_s8 = sld [smem:[#allocation3 + $0x80]]  ;;  %s144_s12 = scalar_lea.vmem [#allocation4], %s590_s0  ;;  %v100_v52 = vld [vmem:[%s99_s18] sm:$0x1]  ;;  %v204_v53 = vrot.slane %v96_v41, 3  ;;  %v225_v59 = vsel %vm224_vm6, %v223_v48, %v189_v40 }
  0x24   :  { %s607_s9 = sld [smem:[#allocation3 + $0x82]]  ;;  %v145_v37 = vld [vmem:[%s144_s12] sm:$0x1]  ;;  %s148_s17 = scalar_lea.vmem [#allocation4], %s592_s3  ;;  %v229_v54 = vsel %vm218_vm3, %v228_v43, %v201_v42  ;;  %v207_v0 = vrot.slane %v100_v52, 2 }
  0x25   :  { %s610_s14 = sld [smem:[#allocation3 + $0x83]]  ;;  %v149_v44 = vld [vmem:[%s148_s17] sm:$0x1]  ;;  %v255_v45 = vrot.slane %v145_v37, 7  ;;  %v230_v1 = vsel %vm220_vm4, %v229_v54, %v204_v53 }
  0x26   :  { %s615_s26 = sld [smem:[#allocation3 + $0x8e]]  ;;  %v258_v56 = vrot.slane %v149_v44, 6  ;;  %v231_v13 = vsel %vm222_vm5, %v230_v1, %v207_v0 }
  0x27   :  { %s618_s15 = sld [smem:[#allocation3 + $0x8f]]  ;;  %s112_s19 = scalar_lea.vmem [#allocation4], %s599_s30 }
  0x28   :  { %s622_s11 = sld [smem:[#allocation3 + $0x84]]  ;;  %v113_v38 = vld [vmem:[%s112_s19] sm:$0x1]  ;;  %s140_s30 = scalar_lea.vmem [#allocation4], %s588_s22 }
  0x29   :  { %s625_s1 = sld [smem:[#allocation3 + $0x85]]  ;;  %v234_v47 = vrot.slane %v113_v38, 7  ;;  %v141_v49 = vld [vmem:[%s140_s30] sm:$0x1]  ;;  %s108_s10 = scalar_lea.vmem [#allocation4], %s604_s8 }
  0x2a   :  { %s633_s23 = sld [smem:[#allocation3 + $0x86]]  ;;  %s116_s0 = scalar_lea.vmem [#allocation4], %s607_s9  ;;  %v109_v50 = vld [vmem:[%s108_s10] sm:$0x1]  ;;  %v282_v60 = vsel %vm212_vm0, %v141_v49, %v255_v45  ;;  %v291_v45 = vld [vmem:[%s695_s2 + $0x10] sm:$0xff] }
  0x2b   :  { %v117_v46 = vld [vmem:[%s116_s0] sm:$0x1]  ;;  %s643_s3 = sld [smem:[#allocation3 + $0x87]]  ;;  %s152_s9 = scalar_lea.vmem [#allocation4], %s594_s27  ;;  %v275_v61 = vsel %vm212_vm0, %v109_v50, %v234_v47  ;;  %v283_v7 = vsel %vm214_vm1, %v282_v60, %v258_v56 }
  0x2c   :  { %v153_v55 = vld [vmem:[%s152_s9] sm:$0x1]  ;;  %s120_s28 = scalar_lea.vmem [#allocation4], %s610_s14  ;;  %v237_v58 = vrot.slane %v117_v46, 6  ;;  %s103_s8 = scalar_lea.vmem [#allocation4], %s586_s21  ;;  %v292_v46 = vld [vmem:[%s695_s2 + $0x18] sm:$0xff] }
  0x2d   :  { %v121_v57 = vld [vmem:[%s120_s28] sm:$0x1]  ;;  %s156_s27 = scalar_lea.vmem [#allocation4], %s596_s29  ;;  %v261_v3 = vrot.slane %v153_v55, 5  ;;  %s160_s21 = scalar_lea.vmem [#allocation4], %s601_s6 }
  0x2e   :  { %v104_v63 = vld [vmem:[%s103_s8] sm:$0x1]  ;;  %s124_s14 = scalar_lea.vmem [#allocation4], %s622_s11  ;;  %v240_v5 = vrot.slane %v121_v57, 5  ;;  %v276_v8 = vsel %vm214_vm1, %v275_v61, %v237_v58  ;;  %s164_s5 = scalar_lea.vmem [#allocation4], %s615_s26 }
  0x2f   :  { %v157_v2 = vld [vmem:[%s156_s27] sm:$0x1]  ;;  %v210_v11 = vrot.slane %v104_v63, 1  ;;  %s128_s29 = scalar_lea.vmem [#allocation4], %s625_s1  ;;  %v284_v18 = vsel %vm216_vm2, %v283_v7, %v261_v3  ;;  %s168_s16 = scalar_lea.vmem [#allocation4], %s618_s15 }
  0x30   :  { %v125_v4 = vld [vmem:[%s124_s14] sm:$0x1]  ;;  %v264_v15 = vrot.slane %v157_v2, 4  ;;  %v277_v19 = vsel %vm216_vm2, %v276_v8, %v240_v5  ;;  %s132_s11 = scalar_lea.vmem [#allocation4], %s633_s23  ;;  %s519_s23 = smov [#allocation7]  }
  0x31   :  { %v161_v14 = vld [vmem:[%s160_s21] sm:$0x1]  ;;  %v243_v17 = vrot.slane %v125_v4, 4  ;;  %v232_v22 = vsel %vm224_vm6, %v231_v13, %v210_v11  ;;  %s136_s7 = scalar_lea.vmem [#allocation4], %s643_s3  ;;  %s361_s13 = sshll.u32 %s519_s23, 4  ;;  %s362_s13 = int_to_ptr.vmem [resolvable:$true] %s361_s13 }
  0x32   :  { %v129_v16 = vld [vmem:[%s128_s29] sm:$0x1]  ;;  %v267_v24 = vrot.slane %v161_v14, 3  ;;  %v285_v27 = vsel %vm218_vm3, %v284_v18, %v264_v15  ;;  %s363_s30 = sshll.u32 %s697_s4, 4  ;;  %s364_s30 = int_to_ptr.hbm [resolvable:$true] %s363_s30 }
  0x33   :  { %v165_v23 = vld [vmem:[%s164_s5] sm:$0x1]  ;;  %v246_v26 = vrot.slane %v129_v16, 3  ;;  %v278_v28 = vsel %vm218_vm3, %v277_v19, %v243_v17 }
  0x34   :  { %v133_v25 = vld [vmem:[%s132_s11] sm:$0x1]  ;;  %v270_v32 = vrot.slane %v165_v23, 2  ;;  %v286_v37 = vsel %vm220_vm4, %v285_v27, %v267_v24 }
  0x35   :  { %v169_v31 = vld [vmem:[%s168_s16] sm:$0x1]  ;;  %v249_v34 = vrot.slane %v133_v25, 2  ;;  %v279_v38 = vsel %vm220_vm4, %v278_v28, %v246_v26 }
  0x36   :  { %v137_v33 = vld [vmem:[%s136_s7] sm:$0x1]  ;;  %v273_v40 = vrot.slane %v169_v31, 1  ;;  %v287_v43 = vsel %vm222_vm5, %v286_v37, %v270_v32 }
  0x37   :  { %v252_v41 = vrot.slane %v137_v33, 1  ;;  %v280_v44 = vsel %vm222_vm5, %v279_v38, %v249_v34 }
  0x38   :  { %v288_v47 = vsel %vm224_vm6, %v287_v43, %v273_v40 }
  0x39   :  { %v281_v48 = vsel %vm224_vm6, %v280_v44, %v252_v41 }
  0x69   :  { %v328_v51 = vpop.permute.xlu2 %327 }
  0x6a   :  { %v345_v6 = vmul.f32 %v328_v51, %v225_v59 }
  0x71   :  { %v333_v21 = vpop.permute.xlu2 %332 }
  0x72   :  { %v346_v30 = vmul.f32 %v333_v21, %v232_v22 }
  0x81   :  { %v314_v9 = vpop.permute.xlu1 %313 }
  0x82   :  { %v304_v10 = vpop.permute.xlu0 %303  ;;  %v323_v51 = vmul.f32 %v314_v9, %v291_v45 }
  0x83   :  { %v321_v12 = vmul.f32 %v304_v10, %v289_v62 }
  0x85   :  { %v349_v20 = vadd.f32 %v345_v6, %v321_v12 }
  0x87   :  { %353 = vst [vmem:[#allocation7] sm:$0xff] %v349_v20 }
  0x89   :  { %v319_v35 = vpop.permute.xlu1 %318 }
  0x8a   :  { %v309_v36 = vpop.permute.xlu0 %308  ;;  %v324_v52 = vmul.f32 %v319_v35, %v292_v46 }
  0x8b   :  { %v322_v39 = vmul.f32 %v309_v36, %v290_v29 }
  0x8d   :  { %v350_v42 = vadd.f32 %v346_v30, %v322_v39 }
  0x8f   :  { %354 = vst [vmem:[#allocation7 + $0x8] sm:$0xff] %v350_v42 }
  0x91   :  { %v343_v49 = vpop.permute.xlu1 %342 }
  0x92   :  { %v338_v50 = vpop.permute.xlu0 %337  ;;  %v348_v53 = vmul.f32 %v343_v49, %v288_v47 }
  0x93   :  { %v347_v54 = vmul.f32 %v338_v50, %v281_v48 }
  0x94   :  { %v352_v55 = vadd.f32 %v348_v53, %v324_v52 }
  0x95   :  { %v351_v56 = vadd.f32 %v347_v54, %v323_v51 }
  0x96   :  { %356 = vst [vmem:[#allocation7 + $0x18] sm:$0xff] %v352_v55 }
  0x97   :  { %355 = vst [vmem:[#allocation7 + $0x10] sm:$0xff] %v351_v56 }
  0x98   :  { %369 = dma.vmem_to_hbm [thread:$0]  %s362_s13, 512, %s364_s30, [#allocation6], %s516_s24, %s516_s24, %s517_s25  }
  0x99   :  { %512 = dma.done.wait [#allocation6], 512  }
  0x9a   :  { %513 = vsyncadd [#allocation6], 4294966784 }
  0x9b   :  { %374 = vsyncpa [#allocation5], 1 }
  0x9c   :  { %375 = vsyncpa [#allocation6], 1 }

</bundles_post_ra>
